<compile_context>
chip_gen: v7x
topology: tpu7x:2x2x1
jax: 0.10.0
libtpu: 0.0.40
codegen_flags: <defaults>
</compile_context>

<pallas_src>
import math
from functools import partial

import jax
import jax.numpy as jnp
from jax import lax
from jax.experimental import pallas as pl
from jax.experimental.pallas import tpu as pltpu

LANE = 128  # TPU lane width


def _round_up(n, m):
    return (n + m - 1) // m * m


# ---------------------------------------------------------------------------
# Kernel
# ---------------------------------------------------------------------------
def mlp_kernel(p_ref, x_ref, o_ref, *, chunk, approx):
    """p_ref: (24, 16) packed params (f32, VMEM-resident, sublane-aligned).
    x_ref: (9, TB) feature-major batch tile (f32 or bf16).
    o_ref: (1, TB) lane-dense f32 output tile."""
    p = p_ref[...]                                  # (24, 16) f32

    # Sublane-8 aligned unpack (no cross-tile realignment).
    w1, b1 = p[0:6, 0:9],   p[0:6, 15:16]           # (6, 9), (6, 1)
    w2, b2 = p[8:14, 0:6],  p[8:14, 15:16]          # (6, 6), (6, 1)
    w3, b3 = p[16:17, 0:6], p[16:17, 15:16]         # (1, 6), (1, 1)

    def dense(w, b, h):
        # (m, k) @ (k, c) + (m, 1) as unrolled VPU broadcast-MACs (k <= 9).
        # Keeps the work off the <1%-utilized MXU push slot; exact f32.
        m, k = w.shape
        acc = jnp.broadcast_to(b, (m, h.shape[1]))
        for kk in range(k):
            acc = acc + w[:, kk:kk + 1] * h[kk:kk + 1, :]
        return acc

    nchunks = x_ref.shape[1] // chunk               # static (TB % chunk == 0)

    def body(c, carry):
        c0 = pl.multiple_of(c * chunk, chunk)
        xc = x_ref[:, pl.ds(c0, chunk)].astype(jnp.float32)      # (9, chunk)
        # layer 1: Linear(9->6) + ReLU   (dropout p=0.2 is identity in eval)
        h1 = jnp.maximum(dense(w1, b1, xc), 0.0)
        # layer 2: Linear(6->6) + ReLU   (dropout p=0.2 is identity in eval)
        h2 = jnp.maximum(dense(w2, b2, h1), 0.0)
        # layer 3: Linear(6->1) + Sigmoid = 1 / (1 + exp(-z))  (EUP exp+recip)
        z = dense(w3, b3, h2)                                    # (1, chunk)
        o_ref[:, pl.ds(c0, chunk)] = pl.reciprocal(
            1.0 + jnp.exp(-z), approx=approx
        ).astype(o_ref.dtype)
        return carry

    lax.fori_loop(0, nchunks, body, 0)


# ---------------------------------------------------------------------------
# Parameter packing (sublane-8 aligned slab)
# ---------------------------------------------------------------------------
def pack_params(p):
    """Pack W1,b1,W2,b2,W3,b3 (PyTorch (out,in) layout) into a (24,16) slab.
    Each matrix starts on a sublane-8 boundary; biases live in column 15."""
    slab = jnp.zeros((24, 16), jnp.float32)
    slab = slab.at[0:6, 0:9].set(p["w1"].astype(jnp.float32))
    slab = slab.at[0:6, 15].set(p["b1"].astype(jnp.float32))
    slab = slab.at[8:14, 0:6].set(p["w2"].astype(jnp.float32))
    slab = slab.at[8:14, 15].set(p["b2"].astype(jnp.float32))
    slab = slab.at[16, 0:6].set(p["w3"][0].astype(jnp.float32))
    slab = slab.at[16, 15].set(p["b3"][0].astype(jnp.float32))
    return slab


# ---------------------------------------------------------------------------
# Wrappers
# ---------------------------------------------------------------------------
def titanic_mlp_feature_major(xt, params, *, tb=32768,
                              x_dtype=jnp.bfloat16, approx_sigmoid=True):
    """xt: (9, B) feature-major activations (preferred entry point: no extra
    transpose HBM pass). Returns (B, 1) float32.

    tb: batch tile (lanes per grid step). Default 32768 keeps the per-step
    footprint (~6 MiB double-buffered) under v5e's 16 MiB scoped-VMEM default
    and v7x's 32 MiB; on v6e, tb can be pushed to 128K-256K with
    vmem_limit_bytes raised. On v7x prefer n_blocks >= 4 so megacore sharding
    keeps both TCs double-buffered.
    """
    B = xt.shape[1]
    slab = pack_params(params)

    # Pad only to a lane multiple (not to tb) -> <1% wasted DMA/compute.
    Bp = _round_up(B, LANE)
    xt = xt.astype(x_dtype)
    if Bp != B:
        xt = jnp.pad(xt, ((0, 0), (0, Bp - B)))

    # Tile: multiple of 128, no larger than the padded batch.
    tb = max(LANE, min(_round_up(tb, LANE), Bp))
    n_blocks = pl.cdiv(Bp, tb)              # partial last block is masked by Pallas

    # Inner-chunk size: keeps h1/h2 intermediates in a few vregs as tb grows.
    chunk = math.gcd(tb, 512)

    kernel = partial(mlp_kernel, chunk=chunk, approx=approx_sigmoid)

    out_t = pl.pallas_call(
        kernel,
        out_shape=jax.ShapeDtypeStruct((1, Bp), jnp.float32),
        grid_spec=pltpu.PrefetchScalarGridSpec(
            num_scalar_prefetch=0,
            grid=(n_blocks,),
            in_specs=[
                # Packed params: constant index_map -> stays VMEM-resident.
                pl.BlockSpec((24, 16), lambda i: (0, 0)),
                # Batch tile of the feature-major input (lane-dense, pipelined).
                pl.BlockSpec((9, tb), lambda i: (0, i)),
            ],
            out_specs=pl.BlockSpec((1, tb), lambda i: (0, i)),
        ),
        compiler_params=pltpu.CompilerParams(
            # Batch axis is embarrassingly parallel (megacore sharding on v7x).
            dimension_semantics=("parallel",),
            # Footprint fits the default scoped VMEM on every generation, so
            # no vmem_limit_bytes override; raise it (v6e) to push tb higher.
        ),
    )(slab, xt)

    # Drop lane padding, return PyTorch-shaped (B, 1).
    return out_t[0, :B].reshape(B, 1)


def titanic_mlp(x, params, **kw):
    """x: (B, 9) batch-major (PyTorch convention). NOTE: the transpose below is
    an extra HBM pass; feed (9, B) via titanic_mlp_feature_major when the
    producer can emit feature-major activations."""
    return titanic_mlp_feature_major(x.T, params, **kw)


# ---------------------------------------------------------------------------
# Parameter init mirroring the PyTorch module
# ---------------------------------------------------------------------------
def init_params(key):
    """w1, w2 ~ U(0,1) (explicit nn.init.uniform in the module); w3 uses
    PyTorch's default Linear init; all biases ~ U(-1/sqrt(fan_in), +)."""
    ks = jax.random.split(key, 6)

    def bias(k, fan_in, fan_out):
        bound = 1.0 / jnp.sqrt(jnp.float32(fan_in))
        return jax.random.uniform(k, (fan_out,), jnp.float32, -bound, bound)

    w1 = jax.random.uniform(ks[0], (6, 9), jnp.float32)            # nn.init.uniform
    b1 = bias(ks[1], 9, 6)
    w2 = jax.random.uniform(ks[2], (6, 6), jnp.float32)            # nn.init.uniform
    b2 = bias(ks[3], 6, 6)
    bound3 = 1.0 / jnp.sqrt(jnp.float32(6))
    w3 = jax.random.uniform(ks[4], (1, 6), jnp.float32, -bound3, bound3)
    b3 = bias(ks[5], 6, 1)
    return dict(w1=w1, b1=b1, w2=w2, b2=b2, w3=w3, b3=b3)


def reference(x, p):
    hp = jax.lax.Precision.HIGHEST
    h = jnp.maximum(jnp.dot(x, p["w1"].T, precision=hp) + p["b1"], 0.0)
    h = jnp.maximum(jnp.dot(h, p["w2"].T, precision=hp) + p["b2"], 0.0)
    return jax.nn.sigmoid(jnp.dot(h, p["w3"].T, precision=hp) + p["b3"])


if __name__ == "__main__":
    key = jax.random.PRNGKey(0)
    kx, kp = jax.random.split(key)

    # B=300: not a multiple of 128 -> exercises lane padding; with tb=256 the
    # grid has 2 steps and the last block is partial.
    B = 300
    x = jax.random.normal(kx, (B, 9), dtype=jnp.float32)
    params = init_params(kp)
    ref = reference(x, params)

    # 1) Exact path: f32 activations, exact reciprocal, small tile (multi-step
    #    grid + partial last block). VPU MACs are exact f32.
    out_exact = titanic_mlp(x, params, tb=256,
                            x_dtype=jnp.float32, approx_sigmoid=False)
    out_exact = jax.block_until_ready(out_exact)
    assert out_exact.shape == (B, 1)
    assert jnp.allclose(out_exact, ref, atol=1e-4, rtol=1e-4)

    # 2) Fast defaults: bf16 activation DMA + EUP approx reciprocal.
    #    Compare against a reference fed bf16-rounded inputs so only kernel
    #    error (summation order + approx recip) is measured.
    out_fast = jax.block_until_ready(titanic_mlp(x, params))
    ref_bf16_in = reference(x.astype(jnp.bfloat16).astype(jnp.float32), params)
    assert out_fast.shape == (B, 1)
    assert jnp.allclose(out_fast, ref_bf16_in, atol=1e-2, rtol=1e-2)

    print("KERNEL_OK")
</pallas_src>

<mosaic_0001>
module attributes {stable_mosaic.version = 11 : i64} {
  func.func @mlp_kernel(%arg0: i32, %arg1: memref<24x16xf32, #tpu.memory_space<vmem>>, %arg2: memref<9x256xf32, #tpu.memory_space<vmem>>, %arg3: memref<1x256xf32, #tpu.memory_space<vmem>>) attributes {dimension_semantics = [#tpu.dimension_semantics<parallel>], iteration_bounds = array<i64: 2>, scalar_prefetch = 0 : i64, scratch_operands = 0 : i64, tpu.core_type = #tpu.core_type<tc>, window_params = [{pipeline_mode = #tpu.pipeline_mode<synchronous>, transform_indices = @transform_0, window_bounds = array<i64: 24, 16>}, {transform_indices = @transform_1, window_bounds = array<i64: 9, 256>}, {transform_indices = @transform_2, window_bounds = array<i64: 1, 256>}]} {
    %c0 = arith.constant 0 : index
    %c0_0 = arith.constant 0 : index
    %0 = vector.load %arg1[%c0, %c0_0] : memref<24x16xf32, #tpu.memory_space<vmem>>, vector<24x16xf32>
    %1 = vector.extract_strided_slice %0 {offsets = [0, 0], sizes = [6, 9], strides = [1, 1]} : vector<24x16xf32> to vector<6x9xf32>
    %2 = vector.extract_strided_slice %0 {offsets = [0, 15], sizes = [6, 1], strides = [1, 1]} : vector<24x16xf32> to vector<6x1xf32>
    %3 = vector.extract_strided_slice %0 {offsets = [8, 0], sizes = [6, 6], strides = [1, 1]} : vector<24x16xf32> to vector<6x6xf32>
    %4 = vector.extract_strided_slice %0 {offsets = [8, 15], sizes = [6, 1], strides = [1, 1]} : vector<24x16xf32> to vector<6x1xf32>
    %5 = vector.extract_strided_slice %0 {offsets = [16, 0], sizes = [1, 6], strides = [1, 1]} : vector<24x16xf32> to vector<1x6xf32>
    %6 = vector.extract_strided_slice %0 {offsets = [16, 15], sizes = [1, 1], strides = [1, 1]} : vector<24x16xf32> to vector<1x1xf32>
    %c0_i32 = arith.constant 0 : i32
    %c256_i32 = arith.constant 256 : i32
    %7 = arith.muli %c0_i32, %c256_i32 : i32
    %8 = tpu.assume_multiple %7, 256 : i32
    %c0_1 = arith.constant 0 : index
    %9 = arith.index_cast %8 : i32 to index
    %10 = vector.load %arg2[%c0_1, %9] : memref<9x256xf32, #tpu.memory_space<vmem>>, vector<9x256xf32>
    %11 = vector.shape_cast %2 : vector<6x1xf32> to vector<6x1xf32>
    %12 = vector.broadcast %11 : vector<6x1xf32> to vector<6x256xf32>
    %13 = vector.extract_strided_slice %1 {offsets = [0, 0], sizes = [6, 1], strides = [1, 1]} : vector<6x9xf32> to vector<6x1xf32>
    %14 = vector.extract_strided_slice %10 {offsets = [0, 0], sizes = [1, 256], strides = [1, 1]} : vector<9x256xf32> to vector<1x256xf32>
    %15 = vector.broadcast %13 : vector<6x1xf32> to vector<6x256xf32>
    %16 = vector.broadcast %14 : vector<1x256xf32> to vector<6x256xf32>
    %17 = arith.mulf %15, %16 : vector<6x256xf32>
    %18 = arith.addf %12, %17 : vector<6x256xf32>
    %19 = vector.extract_strided_slice %1 {offsets = [0, 1], sizes = [6, 1], strides = [1, 1]} : vector<6x9xf32> to vector<6x1xf32>
    %20 = vector.extract_strided_slice %10 {offsets = [1, 0], sizes = [1, 256], strides = [1, 1]} : vector<9x256xf32> to vector<1x256xf32>
    %21 = vector.broadcast %19 : vector<6x1xf32> to vector<6x256xf32>
    %22 = vector.broadcast %20 : vector<1x256xf32> to vector<6x256xf32>
    %23 = arith.mulf %21, %22 : vector<6x256xf32>
    %24 = arith.addf %18, %23 : vector<6x256xf32>
    %25 = vector.extract_strided_slice %1 {offsets = [0, 2], sizes = [6, 1], strides = [1, 1]} : vector<6x9xf32> to vector<6x1xf32>
    %26 = vector.extract_strided_slice %10 {offsets = [2, 0], sizes = [1, 256], strides = [1, 1]} : vector<9x256xf32> to vector<1x256xf32>
    %27 = vector.broadcast %25 : vector<6x1xf32> to vector<6x256xf32>
    %28 = vector.broadcast %26 : vector<1x256xf32> to vector<6x256xf32>
    %29 = arith.mulf %27, %28 : vector<6x256xf32>
    %30 = arith.addf %24, %29 : vector<6x256xf32>
    %31 = vector.extract_strided_slice %1 {offsets = [0, 3], sizes = [6, 1], strides = [1, 1]} : vector<6x9xf32> to vector<6x1xf32>
    %32 = vector.extract_strided_slice %10 {offsets = [3, 0], sizes = [1, 256], strides = [1, 1]} : vector<9x256xf32> to vector<1x256xf32>
    %33 = vector.broadcast %31 : vector<6x1xf32> to vector<6x256xf32>
    %34 = vector.broadcast %32 : vector<1x256xf32> to vector<6x256xf32>
    %35 = arith.mulf %33, %34 : vector<6x256xf32>
    %36 = arith.addf %30, %35 : vector<6x256xf32>
    %37 = vector.extract_strided_slice %1 {offsets = [0, 4], sizes = [6, 1], strides = [1, 1]} : vector<6x9xf32> to vector<6x1xf32>
    %38 = vector.extract_strided_slice %10 {offsets = [4, 0], sizes = [1, 256], strides = [1, 1]} : vector<9x256xf32> to vector<1x256xf32>
    %39 = vector.broadcast %37 : vector<6x1xf32> to vector<6x256xf32>
    %40 = vector.broadcast %38 : vector<1x256xf32> to vector<6x256xf32>
    %41 = arith.mulf %39, %40 : vector<6x256xf32>
    %42 = arith.addf %36, %41 : vector<6x256xf32>
    %43 = vector.extract_strided_slice %1 {offsets = [0, 5], sizes = [6, 1], strides = [1, 1]} : vector<6x9xf32> to vector<6x1xf32>
    %44 = vector.extract_strided_slice %10 {offsets = [5, 0], sizes = [1, 256], strides = [1, 1]} : vector<9x256xf32> to vector<1x256xf32>
    %45 = vector.broadcast %43 : vector<6x1xf32> to vector<6x256xf32>
    %46 = vector.broadcast %44 : vector<1x256xf32> to vector<6x256xf32>
    %47 = arith.mulf %45, %46 : vector<6x256xf32>
    %48 = arith.addf %42, %47 : vector<6x256xf32>
    %49 = vector.extract_strided_slice %1 {offsets = [0, 6], sizes = [6, 1], strides = [1, 1]} : vector<6x9xf32> to vector<6x1xf32>
    %50 = vector.extract_strided_slice %10 {offsets = [6, 0], sizes = [1, 256], strides = [1, 1]} : vector<9x256xf32> to vector<1x256xf32>
    %51 = vector.broadcast %49 : vector<6x1xf32> to vector<6x256xf32>
    %52 = vector.broadcast %50 : vector<1x256xf32> to vector<6x256xf32>
    %53 = arith.mulf %51, %52 : vector<6x256xf32>
    %54 = arith.addf %48, %53 : vector<6x256xf32>
    %55 = vector.extract_strided_slice %1 {offsets = [0, 7], sizes = [6, 1], strides = [1, 1]} : vector<6x9xf32> to vector<6x1xf32>
    %56 = vector.extract_strided_slice %10 {offsets = [7, 0], sizes = [1, 256], strides = [1, 1]} : vector<9x256xf32> to vector<1x256xf32>
    %57 = vector.broadcast %55 : vector<6x1xf32> to vector<6x256xf32>
    %58 = vector.broadcast %56 : vector<1x256xf32> to vector<6x256xf32>
    %59 = arith.mulf %57, %58 : vector<6x256xf32>
    %60 = arith.addf %54, %59 : vector<6x256xf32>
    %61 = vector.extract_strided_slice %1 {offsets = [0, 8], sizes = [6, 1], strides = [1, 1]} : vector<6x9xf32> to vector<6x1xf32>
    %62 = vector.extract_strided_slice %10 {offsets = [8, 0], sizes = [1, 256], strides = [1, 1]} : vector<9x256xf32> to vector<1x256xf32>
    %63 = vector.broadcast %61 : vector<6x1xf32> to vector<6x256xf32>
    %64 = vector.broadcast %62 : vector<1x256xf32> to vector<6x256xf32>
    %65 = arith.mulf %63, %64 : vector<6x256xf32>
    %66 = arith.addf %60, %65 : vector<6x256xf32>
    %cst = arith.constant 0.000000e+00 : f32
    %67 = vector.broadcast %cst : f32 to vector<6x256xf32>
    %68 = arith.maximumf %66, %67 : vector<6x256xf32>
    %69 = vector.shape_cast %4 : vector<6x1xf32> to vector<6x1xf32>
    %70 = vector.broadcast %69 : vector<6x1xf32> to vector<6x256xf32>
    %71 = vector.extract_strided_slice %3 {offsets = [0, 0], sizes = [6, 1], strides = [1, 1]} : vector<6x6xf32> to vector<6x1xf32>
    %72 = vector.extract_strided_slice %68 {offsets = [0, 0], sizes = [1, 256], strides = [1, 1]} : vector<6x256xf32> to vector<1x256xf32>
    %73 = vector.broadcast %71 : vector<6x1xf32> to vector<6x256xf32>
    %74 = vector.broadcast %72 : vector<1x256xf32> to vector<6x256xf32>
    %75 = arith.mulf %73, %74 : vector<6x256xf32>
    %76 = arith.addf %70, %75 : vector<6x256xf32>
    %77 = vector.extract_strided_slice %3 {offsets = [0, 1], sizes = [6, 1], strides = [1, 1]} : vector<6x6xf32> to vector<6x1xf32>
    %78 = vector.extract_strided_slice %68 {offsets = [1, 0], sizes = [1, 256], strides = [1, 1]} : vector<6x256xf32> to vector<1x256xf32>
    %79 = vector.broadcast %77 : vector<6x1xf32> to vector<6x256xf32>
    %80 = vector.broadcast %78 : vector<1x256xf32> to vector<6x256xf32>
    %81 = arith.mulf %79, %80 : vector<6x256xf32>
    %82 = arith.addf %76, %81 : vector<6x256xf32>
    %83 = vector.extract_strided_slice %3 {offsets = [0, 2], sizes = [6, 1], strides = [1, 1]} : vector<6x6xf32> to vector<6x1xf32>
    %84 = vector.extract_strided_slice %68 {offsets = [2, 0], sizes = [1, 256], strides = [1, 1]} : vector<6x256xf32> to vector<1x256xf32>
    %85 = vector.broadcast %83 : vector<6x1xf32> to vector<6x256xf32>
    %86 = vector.broadcast %84 : vector<1x256xf32> to vector<6x256xf32>
    %87 = arith.mulf %85, %86 : vector<6x256xf32>
    %88 = arith.addf %82, %87 : vector<6x256xf32>
    %89 = vector.extract_strided_slice %3 {offsets = [0, 3], sizes = [6, 1], strides = [1, 1]} : vector<6x6xf32> to vector<6x1xf32>
    %90 = vector.extract_strided_slice %68 {offsets = [3, 0], sizes = [1, 256], strides = [1, 1]} : vector<6x256xf32> to vector<1x256xf32>
    %91 = vector.broadcast %89 : vector<6x1xf32> to vector<6x256xf32>
    %92 = vector.broadcast %90 : vector<1x256xf32> to vector<6x256xf32>
    %93 = arith.mulf %91, %92 : vector<6x256xf32>
    %94 = arith.addf %88, %93 : vector<6x256xf32>
    %95 = vector.extract_strided_slice %3 {offsets = [0, 4], sizes = [6, 1], strides = [1, 1]} : vector<6x6xf32> to vector<6x1xf32>
    %96 = vector.extract_strided_slice %68 {offsets = [4, 0], sizes = [1, 256], strides = [1, 1]} : vector<6x256xf32> to vector<1x256xf32>
    %97 = vector.broadcast %95 : vector<6x1xf32> to vector<6x256xf32>
    %98 = vector.broadcast %96 : vector<1x256xf32> to vector<6x256xf32>
    %99 = arith.mulf %97, %98 : vector<6x256xf32>
    %100 = arith.addf %94, %99 : vector<6x256xf32>
    %101 = vector.extract_strided_slice %3 {offsets = [0, 5], sizes = [6, 1], strides = [1, 1]} : vector<6x6xf32> to vector<6x1xf32>
    %102 = vector.extract_strided_slice %68 {offsets = [5, 0], sizes = [1, 256], strides = [1, 1]} : vector<6x256xf32> to vector<1x256xf32>
    %103 = vector.broadcast %101 : vector<6x1xf32> to vector<6x256xf32>
    %104 = vector.broadcast %102 : vector<1x256xf32> to vector<6x256xf32>
    %105 = arith.mulf %103, %104 : vector<6x256xf32>
    %106 = arith.addf %100, %105 : vector<6x256xf32>
    %cst_2 = arith.constant 0.000000e+00 : f32
    %107 = vector.broadcast %cst_2 : f32 to vector<6x256xf32>
    %108 = arith.maximumf %106, %107 : vector<6x256xf32>
    %109 = vector.shape_cast %6 : vector<1x1xf32> to vector<1x1xf32>
    %110 = vector.broadcast %109 : vector<1x1xf32> to vector<1x256xf32>
    %111 = vector.extract_strided_slice %5 {offsets = [0, 0], sizes = [1, 1], strides = [1, 1]} : vector<1x6xf32> to vector<1x1xf32>
    %112 = vector.extract_strided_slice %108 {offsets = [0, 0], sizes = [1, 256], strides = [1, 1]} : vector<6x256xf32> to vector<1x256xf32>
    %113 = vector.broadcast %111 : vector<1x1xf32> to vector<1x256xf32>
    %114 = arith.mulf %113, %112 : vector<1x256xf32>
    %115 = arith.addf %110, %114 : vector<1x256xf32>
    %116 = vector.extract_strided_slice %5 {offsets = [0, 1], sizes = [1, 1], strides = [1, 1]} : vector<1x6xf32> to vector<1x1xf32>
    %117 = vector.extract_strided_slice %108 {offsets = [1, 0], sizes = [1, 256], strides = [1, 1]} : vector<6x256xf32> to vector<1x256xf32>
    %118 = vector.broadcast %116 : vector<1x1xf32> to vector<1x256xf32>
    %119 = arith.mulf %118, %117 : vector<1x256xf32>
    %120 = arith.addf %115, %119 : vector<1x256xf32>
    %121 = vector.extract_strided_slice %5 {offsets = [0, 2], sizes = [1, 1], strides = [1, 1]} : vector<1x6xf32> to vector<1x1xf32>
    %122 = vector.extract_strided_slice %108 {offsets = [2, 0], sizes = [1, 256], strides = [1, 1]} : vector<6x256xf32> to vector<1x256xf32>
    %123 = vector.broadcast %121 : vector<1x1xf32> to vector<1x256xf32>
    %124 = arith.mulf %123, %122 : vector<1x256xf32>
    %125 = arith.addf %120, %124 : vector<1x256xf32>
    %126 = vector.extract_strided_slice %5 {offsets = [0, 3], sizes = [1, 1], strides = [1, 1]} : vector<1x6xf32> to vector<1x1xf32>
    %127 = vector.extract_strided_slice %108 {offsets = [3, 0], sizes = [1, 256], strides = [1, 1]} : vector<6x256xf32> to vector<1x256xf32>
    %128 = vector.broadcast %126 : vector<1x1xf32> to vector<1x256xf32>
    %129 = arith.mulf %128, %127 : vector<1x256xf32>
    %130 = arith.addf %125, %129 : vector<1x256xf32>
    %131 = vector.extract_strided_slice %5 {offsets = [0, 4], sizes = [1, 1], strides = [1, 1]} : vector<1x6xf32> to vector<1x1xf32>
    %132 = vector.extract_strided_slice %108 {offsets = [4, 0], sizes = [1, 256], strides = [1, 1]} : vector<6x256xf32> to vector<1x256xf32>
    %133 = vector.broadcast %131 : vector<1x1xf32> to vector<1x256xf32>
    %134 = arith.mulf %133, %132 : vector<1x256xf32>
    %135 = arith.addf %130, %134 : vector<1x256xf32>
    %136 = vector.extract_strided_slice %5 {offsets = [0, 5], sizes = [1, 1], strides = [1, 1]} : vector<1x6xf32> to vector<1x1xf32>
    %137 = vector.extract_strided_slice %108 {offsets = [5, 0], sizes = [1, 256], strides = [1, 1]} : vector<6x256xf32> to vector<1x256xf32>
    %138 = vector.broadcast %136 : vector<1x1xf32> to vector<1x256xf32>
    %139 = arith.mulf %138, %137 : vector<1x256xf32>
    %140 = arith.addf %135, %139 : vector<1x256xf32>
    %cst_3 = arith.constant 0.000000e+00 : f32
    %141 = vector.broadcast %cst_3 : f32 to vector<1x256xf32>
    %142 = arith.subf %141, %140 : vector<1x256xf32>
    %143 = math.exp %142 : vector<1x256xf32>
    %cst_4 = arith.constant 1.000000e+00 : f32
    %144 = vector.broadcast %cst_4 : f32 to vector<1x256xf32>
    %145 = arith.addf %144, %143 : vector<1x256xf32>
    %146 = tpu.reciprocal %145 : vector<1x256xf32> -> vector<1x256xf32>
    %c0_5 = arith.constant 0 : index
    %147 = arith.index_cast %8 : i32 to index
    %148 = vector.load %arg3[%c0_5, %147] : memref<1x256xf32, #tpu.memory_space<vmem>>, vector<1x256xf32>
    tpu.vector_store %arg3[%c0_5, %147], %146 {strides = array<i32>} : memref<1x256xf32, #tpu.memory_space<vmem>>, vector<1x256xf32>,
    %c1_i32 = arith.constant 1 : i32
    return
  }
  func.func @transform_0(%arg0: i32) -> (i32, i32) {
    %c0_i32 = arith.constant 0 : i32
    %c0_i32_0 = arith.constant 0 : i32
    %c0_i32_1 = arith.constant 0 : i32
    return %c0_i32, %c0_i32_0 : i32, i32
  }
  func.func @transform_1(%arg0: i32) -> (i32, i32) {
    %c0_i32 = arith.constant 0 : i32
    %c0_i32_0 = arith.constant 0 : i32
    return %c0_i32, %arg0 : i32, i32
  }
  func.func @transform_2(%arg0: i32) -> (i32, i32) {
    %c0_i32 = arith.constant 0 : i32
    %c0_i32_0 = arith.constant 0 : i32
    return %c0_i32, %arg0 : i32, i32
  }
}

</mosaic_0001>

<bundles_post_ra>
// kernel: tpu_custom_call.1
= control target key start
LH: loop header
LB: loop body
LE: loop exit
PB: predicated region body
PF: predicated region fallthrough
CT: control target
= control target key end

     0   :  { %7 = vsyncpa [#allocation3], 0  ;;  %s1110_s0 = inlined_call_operand.vmem [shape: f32[24,16], index: 0, kind: input, shape index: {}]   ;;  %s1111_s1 = inlined_call_operand.hbm [shape: f32[9,384], index: 1, kind: input, shape index: {}]   ;;  %s1112_s2 = inlined_call_operand.hbm [shape: f32[1,384], index: 2, kind: output, shape index: {}]  }
   0x1   :  { %9 = vsyncpa [#allocation3 + $0x1], 0 }
   0x2   :  { %10 = vsyncpa [#allocation4], 0 }
   0x3   :  { %12 = vsyncpa [#allocation4 + $0x1], 0  ;;  %s875_s9 = smov 0   ;;  %s877_s10 = smov 0  }
   0x4   :  { %s879_s11 = smov 0   ;;  %s881_s12 = smov 0  }
   0x5 LB: > { %s896_s13 = sadd.s32 4294967295, %s843_s12   ;;  %s638_s14 = sadd.s32 4294967294, %s843_s12   ;;  %s843_s12 = sphi %s881_s12, %s1122_s12   ;;  %s839_s11 = sphi %s879_s11, %s1121_s11   ;;  %s835_s10 = sphi %s877_s10, %s1120_s10   ;;  %s831_s9 = sphi %s875_s9, %s1119_s9  }
   0x6   : > { %s900_s15 = sadd.s32 1, %s843_s12   ;;  %s46_s16 = sadd.s32 1, %s839_s11 }
   0x7   : > { %s43_s17 = ssub.s32 %s843_s12, %s900_s15  ;;  %p53_p0 = scmp.ne.s32.totalorder %s839_s11, %s835_s10 }
   0x8   : > { %p44_p1 = scmp.eq.s32.totalorder %s43_s17, 0  ;;  %p54_p2 = scmp.eq.s32.totalorder %s843_s12, 0 }
   0x9   : > { %p59_p3 = scmp.ne.s32.totalorder %s835_s10, %s831_s9  ;;  %p60_p4 = scmp.eq.s32.totalorder %s896_s13, 0 }
   0xa   : > { %s912_s18 = scalar_select %p44_p1, %s839_s11, %s46_s16  }
   0xb   : > { %p55_p5 = por %p54_p2, %p53_p0  ;;  %p914_p6 = por %p60_p4, %p59_p3 }
   0xc   : > { %p83_p7 = scmp.eq.s32.totalorder %s896_s13, 1  ;;  %p89_p8 = scmp.eq.s32.totalorder %s638_s14, 1 }
   0xd   : > { %p1113_p11 = scmp.ge.s32.totalorder %s843_s12, 2 }
   0xe   : > { %p919_p9 = por %p83_p7, %p53_p0  ;;  %p923_p10 = por %p89_p8, %p59_p3 }
   0xf   : > { %108 = sbr.rel (%p1113_p11) target bundleno = 57 (0x39), region = 20 }
  0x10   : > { %s1116_s21 = scalar_select %p923_p10, 1, 0 }
  0x16   : > { %111 = sbr.rel (!%p55_p5) target bundleno = 57 (0x39), region = 24  ;;  %s112_s22 = sand.u32 (%p55_p5), 1, %s839_s11  }
  0x17   : > { %s642_s23 = sshll.u32 (%p55_p5), %s843_s12, 1  ;;  %s641_s24 = sshll.u32 (%p55_p5), %s112_s22, 5 }
  0x18   : > { %s118_s25 = ssub.s32 (%p55_p5), 3, %s642_s23  ;;  %s938_s28 = scalar_lea.sflag (%p55_p5), [#allocation3], %s112_s22 }
  0x19   : > { %p119_p12 = scmp.lt.s32.totalorder (%p55_p5), %s118_s25, 2  ;;  %s116_s29 = scalar_lea.vmem (%p55_p5), [#allocation2], %s641_s24 }
  0x1d   : > { %s1124_s25 = smov (!%p119_p12, %s118_s25), 2 }
  0x1e   : > { %s935_s26 = sshll.u32 %s1124_s25, 8 }
  0x1f   : > { %s123_s27 = ssub.s32 512, %s935_s26 }
  0x20   : > { %124 = vsyncadd %s938_s28, %s123_s27  ;;  %p644_p13 = scmp.ne.s32.totalorder %s935_s26, 0  ;;  %s661_s30 = sshll.u32 %s843_s12, 8 }
  0x21   : > { %s946_s5 = scalar_lea.hbm %s1111_s1, %s661_s30  ;;  %s646_s6 = sshll.u32 %s1124_s25, 3 }
  0x22   : > { %s130_s7 = sshll.u32 %s116_s29, 4  ;;  %s749_s8 = scalar_lea.hbm %s946_s5, %s935_s26  ;;  %s949_s7 = int_to_ptr.vmem [resolvable:$true] %s130_s7 }
  0x23   : > { %p750_p0 = scmp.ne.s32.totalorder %s946_s5, %s749_s8  ;;  %s753_s17 = scalar_lea.hbm %s1111_s1, 768 }
  0x24   : > { %p754_p3 = scmp.lt.u32.totalorder %s946_s5, %s1111_s1  ;;  %p755_p4 = scmp.lt.u32.totalorder %s753_s17, %s749_s8 }
  0x25   : > { %p751_p1 = pnand %p750_p0, %p644_p13  ;;  %p757_p7 = scmp.lt.u32.totalorder %s749_s8, %s946_s5 }
  0x26   : > { %p756_p5 = por %p755_p4, %p754_p3 }
  0x27   : > { %p752_p2 = pneg %p751_p1 }
  0x28   : > { %p758_p8 = por %p757_p7, %p756_p5 }
  0x2a   : > { %p759_p12 = pnand %p758_p8, %p752_p2 }
  0x2c   : > { %762 = shalt.err (!%p759_p12)
}
  0x2d   : > { %s763_s24 = scalar_lea.vmem %s949_s7, %s935_s26  ;;  %s845_s27 = smov [#allocation2]  }
  0x2e   : > { %p764_p0 = scmp.ne.s32.totalorder %s949_s7, %s763_s24  ;;  %s767_s29 = sshll.u32 %s845_s27, 4  ;;  %s768_s29 = int_to_ptr.vmem [resolvable:$false] %s767_s29 }
  0x2f   : > { %s769_s30 = scalar_lea.vmem %s768_s29, 1024  ;;  %p770_p10 = scmp.lt.s32.totalorder %s949_s7, %s768_s29 }
  0x30   : > { %p765_p1 = pnand %p764_p0, %p644_p13  ;;  %p771_p3 = scmp.lt.s32.totalorder %s769_s30, %s763_s24 }
  0x32   : > { %p766_p11 = pneg %p765_p1  ;;  %p772_p4 = por %p771_p3, %p770_p10 }
  0x34   : > { %p773_p5 = pnand %p772_p4, %p766_p11 }
  0x36   : > { %776 = shalt.err (!%p773_p5)
}
  0x37   : > { %s846_s3 = smov 384   ;;  %s847_s4 = smov 256  }
  0x38   : > { %136 = dma.hbm_to_vmem [thread:$0]  (%p644_p13), %s946_s5, %s935_s26, %s949_s7, %s938_s28, %s846_s3, %s847_s4, %s646_s6  }
  0x39 PF: > { %p649_p2 = scmp.ge.s32.totalorder %s843_s12, 1  ;;  %p138_p7 = scmp.lt.s32.totalorder %s843_s12, 3 }
  0x3b   : > { %p139_p10 = pnand %p649_p2, %p138_p7 }
  0x3c   : > { %s981_s8 = sand.u32 (!%p139_p10), 1, %s835_s10  }
  0x3d   : > { %142 = sbr.rel (%p139_p10) target bundleno = 338 (0x152), region = 28  ;;  %s650_s14 = sshll.u32 (!%p139_p10), %s981_s8, 5 }
  0x3e   : > { %s145_s16 = scalar_lea.sflag (!%p139_p10), [#allocation3], %s981_s8  ;;  %s985_s17 = scalar_lea.vmem (!%p139_p10), [#allocation2], %s650_s14 }
  0x44   : > { %822 = dma.done.wait (%p914_p6), %s145_s16, 512  }
  0x45   : > { %824 = vsyncadd (%p914_p6), %s145_s16, 4294966784  ;;  %v848_v0 = vmov 1   ;;  %v849_v1 = vmov 0   ;;  %v179_v2 = vld [vmem:[%s1110_s0] sm:$0xff]  ;;  %v850_v3 = vmov 2   ;;  %v851_v4 = vmov 15  }
  0x46   : > { %719 = vset.pattern.permute.xlu1 %v848_v0  ;;  %717 = vset.pattern.permute.xlu0 %v849_v1  ;;  %v852_v5 = vmov 3   ;;  %v853_v6 = vmov 4   ;;  %v854_v7 = vmov 5   ;;  %v855_v8 = vmov 7   ;;  %v180_v9 = vld [vmem:[%s1110_s0 + $0x8] sm:$0xff]  ;;  %v181_v12 = vld [vmem:[%s1110_s0 + $0x10] sm:$0xff] }
  0x47   : > { %208 = vperm.xlu1 %719, %v179_v2   ;;  %192 = vperm.xlu0 %717, %v179_v2   ;;  %v856_v10 = vmov 6   ;;  %v857_v11 = vmov 8   ;;  %v195_v13 = vlaneseq  ;;  %v182_v16 = vld [vmem:[%s985_s17] sm:$0xff]  ;;  %v183_v17 = vld [vmem:[%s985_s17 + $0x8] sm:$0xff]  ;;  %s651_s7 = sshll.u32 %s981_s8, 1  ;;  %s549_s23 = scalar_lea.sflag [#allocation4], %s981_s8 }
  0x48   : > { %s168_s22 = scalar_lea.vmem [#allocation5], %s651_s7  ;;  %s655_s24 = sshll.u32 (%p919_p9), %s896_s13, 1 }
  0x49   : > { %v1001_v14 = vshrl.u32 %v195_v13, 7  ;;  %vm545_vm0 = vcmp.lt.s32.totalorder %v195_v13, 256  ;;  %s557_s27 = ssub.s32 (%p919_p9), 3, %s655_s24 }
  0x4a   : > { %p558_p6 = scmp.lt.s32.totalorder (%p919_p9), %s557_s27, 2 }
  0x4b   : > { %720 = vset.pattern.permute.xlu1 %v850_v3  ;;  %718 = vset.pattern.permute.xlu0 %v851_v4  ;;  %v1004_v15 = vsub.s32 0, %v1001_v14  ;;  %v1009_v18 = vsub.s32 1, %v1001_v14  ;;  %v1014_v23 = vsub.s32 2, %v1001_v14  ;;  %v1019_v28 = vsub.s32 3, %v1001_v14 }
  0x4c   : > { %224 = vperm.xlu1 %720, %v179_v2   ;;  %188 = vperm.xlu0 %718, %v179_v2   ;;  %v1024_v33 = vsub.s32 4, %v1001_v14  ;;  %v1029_v40 = vsub.s32 5, %v1001_v14  ;;  %v293_v55 = vsub.s32 6, %v1001_v14  ;;  %v309_v56 = vsub.s32 7, %v1001_v14 }
  0x4d   : > { %v198_v19 = vrot.slane %v182_v16, %v1004_v15  ;;  %v202_v20 = vrot.slane %v183_v17, %v1004_v15  ;;  %v214_v24 = vrot.slane %v182_v16, %v1009_v18  ;;  %v218_v25 = vrot.slane %v183_v17, %v1009_v18 }
  0x4e   : > { %v230_v29 = vrot.slane %v182_v16, %v1014_v23  ;;  %v234_v30 = vrot.slane %v183_v17, %v1014_v23  ;;  %v246_v38 = vrot.slane %v182_v16, %v1019_v28  ;;  %v250_v39 = vrot.slane %v183_v17, %v1019_v28 }
  0x4f   : > { %v262_v45 = vrot.slane %v182_v16, %v1024_v33  ;;  %v266_v46 = vrot.slane %v183_v17, %v1024_v33  ;;  %v278_v53 = vrot.slane %v182_v16, %v1029_v40  ;;  %v282_v54 = vrot.slane %v183_v17, %v1029_v40 }
  0x50   : > { %721 = vset.pattern.permute.xlu1 %v852_v5  ;;  %722 = vset.pattern.permute.xlu0 %v853_v6  ;;  %v294_v62 = vrot.slane %v182_v16, %v293_v55  ;;  %v298_v63 = vrot.slane %v183_v17, %v293_v55 }
  0x51   : > { %240 = vperm.xlu1 %721, %v179_v2   ;;  %256 = vperm.xlu0 %722, %v179_v2  }
  0x55   : > { %723 = vset.pattern.permute.xlu1 %v854_v7  ;;  %725 = vset.pattern.permute.xlu0 %v855_v8 }
  0x56   : > { %272 = vperm.xlu1 %723, %v179_v2   ;;  %304 = vperm.xlu0 %725, %v179_v2  }
  0x5a   : > { %724 = vset.pattern.permute.xlu1 %v856_v10  ;;  %728 = vset.pattern.permute.xlu0 %v851_v4 }
  0x5b   : > { %288 = vperm.xlu1 %724, %v179_v2   ;;  %339 = vperm.xlu0 %728, %v180_v9  }
  0x5f   : > { %726 = vset.pattern.permute.xlu1 %v857_v11  ;;  %731 = vset.pattern.permute.xlu0 %v852_v5 }
  0x60   : > { %320 = vperm.xlu1 %726, %v179_v2   ;;  %391 = vperm.xlu0 %731, %v180_v9  }
  0x64   : > { %727 = vset.pattern.permute.xlu1 %v849_v1  ;;  %734 = vset.pattern.permute.xlu0 %v849_v1  ;;  %v314_v1 = vrot.slane %v183_v17, %v309_v56 }
  0x65   : > { %343 = vperm.xlu1 %727, %v180_v9   ;;  %446 = vperm.xlu0 %734, %v181_v12  }
  0x69   : > { %729 = vset.pattern.permute.xlu1 %v848_v0  ;;  %737 = vset.pattern.permute.xlu0 %v850_v3 }
  0x6a   : > { %359 = vperm.xlu1 %729, %v180_v9   ;;  %468 = vperm.xlu0 %737, %v181_v12  }
  0x6e   : > { %730 = vset.pattern.permute.xlu1 %v850_v3  ;;  %740 = vset.pattern.permute.xlu0 %v854_v7 }
  0x6f   : > { %375 = vperm.xlu1 %730, %v180_v9   ;;  %504 = vperm.xlu0 %740, %v181_v12  }
  0x73   : > { %732 = vset.pattern.permute.xlu1 %v853_v6 }
  0x74   : > { %407 = vperm.xlu1 %732, %v180_v9  }
  0x78   : > { %733 = vset.pattern.permute.xlu1 %v854_v7 }
  0x79   : > { %423 = vperm.xlu1 %733, %v180_v9  }
  0x7d   : > { %735 = vset.pattern.permute.xlu1 %v851_v4 }
  0x7e   : > { %442 = vperm.xlu1 %735, %v181_v12  }
  0x82   : > { %736 = vset.pattern.permute.xlu1 %v848_v0  ;;  %v310_v0 = vrot.slane %v182_v16, %v309_v56 }
  0x83   : > { %454 = vperm.xlu1 %736, %v181_v12  }
  0x87   : > { %738 = vset.pattern.permute.xlu1 %v852_v5 }
  0x88   : > { %480 = vperm.xlu1 %738, %v181_v12  }
  0x8c   : > { %739 = vset.pattern.permute.xlu1 %v853_v6 }
  0x8d   : > { %492 = vperm.xlu1 %739, %v181_v12  }
  0xc6   : > { %v209_v21 = vpop.permute.xlu1 %208  ;;  %v193_v22 = vpop.permute.xlu0 %192 }
  0xc7   : > { %v203_v26 = vmul.f32 %v198_v19, %v193_v22  ;;  %v204_v27 = vmul.f32 %v202_v20, %v193_v22  ;;  %v219_v34 = vmul.f32 %v214_v24, %v209_v21  ;;  %v220_v35 = vmul.f32 %v218_v25, %v209_v21  ;;  %v652_v22 = vld [vmem:[%s985_s17 + $0x10] ss:$0 sm:$0xff]  ;;  %v653_v24 = vld [vmem:[%s985_s17 + $0x18] ss:$0 sm:$0xff] }
  0xcb   : > { %v225_v31 = vpop.permute.xlu1 %224  ;;  %v189_v32 = vpop.permute.xlu0 %188 }
  0xcc   : > { %v205_v36 = vadd.f32 %v203_v26, %v189_v32  ;;  %v206_v37 = vadd.f32 %v204_v27, %v189_v32  ;;  %v235_v41 = vmul.f32 %v230_v29, %v225_v31  ;;  %v236_v42 = vmul.f32 %v234_v30, %v225_v31 }
  0xce   : > { %v221_v43 = vadd.f32 %v219_v34, %v205_v36  ;;  %v222_v44 = vadd.f32 %v220_v35, %v206_v37 }
  0xd0   : > { %v241_v47 = vpop.permute.xlu1 %240  ;;  %v237_v48 = vadd.f32 %v235_v41, %v221_v43  ;;  %v238_v49 = vadd.f32 %v236_v42, %v222_v44  ;;  %v257_v50 = vpop.permute.xlu0 %256 }
  0xd1   : > { %v251_v51 = vmul.f32 %v246_v38, %v241_v47  ;;  %v252_v52 = vmul.f32 %v250_v39, %v241_v47  ;;  %v267_v59 = vmul.f32 %v262_v45, %v257_v50  ;;  %v268_v60 = vmul.f32 %v266_v46, %v257_v50 }
  0xd3   : > { %v253_v57 = vadd.f32 %v251_v51, %v237_v48  ;;  %v254_v58 = vadd.f32 %v252_v52, %v238_v49 }
  0xd5   : > { %v273_v61 = vpop.permute.xlu1 %272  ;;  %v269_v2 = vadd.f32 %v267_v59, %v253_v57  ;;  %v270_v3 = vadd.f32 %v268_v60, %v254_v58  ;;  %v305_v6 = vpop.permute.xlu0 %304 }
  0xd6   : > { %v283_v4 = vmul.f32 %v278_v53, %v273_v61  ;;  %v284_v5 = vmul.f32 %v282_v54, %v273_v61  ;;  %v315_v8 = vmul.f32 %v310_v0, %v305_v6  ;;  %v316_v9 = vmul.f32 %v314_v1, %v305_v6 }
  0xd8   : > { %v285_v10 = vadd.f32 %v283_v4, %v269_v2  ;;  %v286_v11 = vadd.f32 %v284_v5, %v270_v3 }
  0xda   : > { %v289_v7 = vpop.permute.xlu1 %288  ;;  %v340_v43 = vpop.permute.xlu0 %339 }
  0xdb   : > { %v299_v12 = vmul.f32 %v294_v62, %v289_v7  ;;  %v300_v19 = vmul.f32 %v298_v63, %v289_v7 }
  0xdd   : > { %v301_v20 = vadd.f32 %v299_v12, %v285_v10  ;;  %v302_v21 = vadd.f32 %v300_v19, %v286_v11 }
  0xdf   : > { %v317_v16 = vadd.f32 %v315_v8, %v301_v20  ;;  %v318_v25 = vadd.f32 %v316_v9, %v302_v21  ;;  %v321_v17 = vpop.permute.xlu1 %320  ;;  %v392_v56 = vpop.permute.xlu0 %391 }
  0xe0   : > { %v331_v26 = vmul.f32 %v652_v22, %v321_v17  ;;  %v332_v27 = vmul.f32 %v653_v24, %v321_v17 }
  0xe2   : > { %v333_v29 = vadd.f32 %v331_v26, %v317_v16  ;;  %v334_v30 = vadd.f32 %v332_v27, %v318_v25 }
  0xe4   : > { %v335_v31 = vmax.f32 %v333_v29, 0.0  ;;  %v336_v32 = vmax.f32 %v334_v30, 0.0  ;;  %v344_v34 = vpop.permute.xlu1 %343  ;;  %v447_v19 = vpop.permute.xlu0 %446 }
  0xe6   : > { %v349_v35 = vrot.slane %v335_v31, %v1004_v15  ;;  %v353_v36 = vrot.slane %v336_v32, %v1004_v15  ;;  %v365_v41 = vrot.slane %v335_v31, %v1009_v18  ;;  %v369_v42 = vrot.slane %v336_v32, %v1009_v18 }
  0xe7   : > { %v381_v48 = vrot.slane %v335_v31, %v1014_v23  ;;  %v385_v49 = vrot.slane %v336_v32, %v1014_v23  ;;  %v397_v50 = vrot.slane %v335_v31, %v1019_v28  ;;  %v401_v15 = vrot.slane %v336_v32, %v1019_v28 }
  0xe8   : > { %v354_v37 = vmul.f32 %v349_v35, %v344_v34  ;;  %v355_v38 = vmul.f32 %v353_v36, %v344_v34  ;;  %v413_v61 = vrot.slane %v335_v31, %v1024_v33  ;;  %v417_v62 = vrot.slane %v336_v32, %v1024_v33 }
  0xe9   : > { %v360_v39 = vpop.permute.xlu1 %359  ;;  %v402_v58 = vmul.f32 %v397_v50, %v392_v56  ;;  %v403_v59 = vmul.f32 %v401_v15, %v392_v56  ;;  %v429_v28 = vrot.slane %v335_v31, %v1029_v40  ;;  %v433_v2 = vrot.slane %v336_v32, %v1029_v40  ;;  %v469_v31 = vpop.permute.xlu0 %468 }
  0xea   : > { %v356_v44 = vadd.f32 %v354_v37, %v340_v43  ;;  %v357_v45 = vadd.f32 %v355_v38, %v340_v43  ;;  %v370_v46 = vmul.f32 %v365_v41, %v360_v39  ;;  %v371_v47 = vmul.f32 %v369_v42, %v360_v39 }
  0xec   : > { %v372_v52 = vadd.f32 %v370_v46, %v356_v44  ;;  %v373_v53 = vadd.f32 %v371_v47, %v357_v45 }
  0xee   : > { %v376_v51 = vpop.permute.xlu1 %375  ;;  %v505_v47 = vpop.permute.xlu0 %504 }
  0xef   : > { %v386_v54 = vmul.f32 %v381_v48, %v376_v51  ;;  %v387_v55 = vmul.f32 %v385_v49, %v376_v51 }
  0xf1   : > { %v388_v18 = vadd.f32 %v386_v54, %v372_v52  ;;  %v389_v57 = vadd.f32 %v387_v55, %v373_v53 }
  0xf3   : > { %v408_v60 = vpop.permute.xlu1 %407  ;;  %v404_v23 = vadd.f32 %v402_v58, %v388_v18  ;;  %v405_v63 = vadd.f32 %v403_v59, %v389_v57 }
  0xf4   : > { %v418_v0 = vmul.f32 %v413_v61, %v408_v60  ;;  %v419_v1 = vmul.f32 %v417_v62, %v408_v60 }
  0xf6   : > { %v420_v4 = vadd.f32 %v418_v0, %v404_v23  ;;  %v421_v5 = vadd.f32 %v419_v1, %v405_v63  ;;  %v858_v0 = vmov 1966171168  }
  0xf7   : > { %v529_v1 = vunpack.c.l.s4 %v858_v0 }
  0xf8   : > { %v424_v3 = vpop.permute.xlu1 %423 }
  0xf9   : > { %v434_v6 = vmul.f32 %v429_v28, %v424_v3  ;;  %v435_v7 = vmul.f32 %v433_v2, %v424_v3  ;;  %v530_v28 = vunpack.c.0.s8 %v529_v1 }
  0xfb   : > { %v436_v8 = vadd.f32 %v434_v6, %v420_v4  ;;  %v437_v9 = vadd.f32 %v435_v7, %v421_v5  ;;  %v533_v3 = vsub.s32 %v530_v28, %v1001_v14 }
  0xfd   : > { %v438_v10 = vmax.f32 %v436_v8, 0.0  ;;  %v439_v11 = vmax.f32 %v437_v9, 0.0  ;;  %v443_v12 = vpop.permute.xlu1 %442 }
  0xff   : > { %v449_v33 = vmul.f32 %v447_v19, %v438_v10  ;;  %v450_v20 = vmul.f32 %v447_v19, %v439_v11  ;;  %v459_v21 = vrot.slane %v438_v10, 1  ;;  %v460_v22 = vrot.slane %v439_v11, 1 }
 0x100   : > { %v471_v24 = vrot.slane %v438_v10, 2  ;;  %v472_v16 = vrot.slane %v439_v11, 2  ;;  %v483_v36 = vrot.slane %v438_v10, 3  ;;  %v484_v37 = vrot.slane %v439_v11, 3 }
 0x101   : > { %v451_v17 = vadd.f32 %v449_v33, %v443_v12  ;;  %v452_v40 = vadd.f32 %v450_v20, %v443_v12  ;;  %v507_v43 = vrot.slane %v438_v10, 5  ;;  %v508_v44 = vrot.slane %v439_v11, 5 }
 0x102   : > { %v455_v25 = vpop.permute.xlu1 %454  ;;  %v475_v32 = vmul.f32 %v471_v24, %v469_v31  ;;  %v476_v34 = vmul.f32 %v472_v16, %v469_v31  ;;  %v495_v45 = vrot.slane %v438_v10, 4  ;;  %v496_v46 = vrot.slane %v439_v11, 4 }
 0x103   : > { %v463_v26 = vmul.f32 %v459_v21, %v455_v25  ;;  %v464_v27 = vmul.f32 %v460_v22, %v455_v25  ;;  %v511_v52 = vmul.f32 %v507_v43, %v505_v47  ;;  %v512_v53 = vmul.f32 %v508_v44, %v505_v47 }
 0x105   : > { %v465_v29 = vadd.f32 %v463_v26, %v451_v17  ;;  %v466_v30 = vadd.f32 %v464_v27, %v452_v40 }
 0x107   : > { %v481_v35 = vpop.permute.xlu1 %480  ;;  %v477_v38 = vadd.f32 %v475_v32, %v465_v29  ;;  %v478_v39 = vadd.f32 %v476_v34, %v466_v30 }
 0x108   : > { %v487_v41 = vmul.f32 %v483_v36, %v481_v35  ;;  %v488_v42 = vmul.f32 %v484_v37, %v481_v35 }
 0x10a   : > { %v489_v49 = vadd.f32 %v487_v41, %v477_v38  ;;  %v490_v50 = vadd.f32 %v488_v42, %v478_v39 }
 0x10c   : > { %v493_v48 = vpop.permute.xlu1 %492 }
 0x10d   : > { %v499_v15 = vmul.f32 %v495_v45, %v493_v48  ;;  %v500_v51 = vmul.f32 %v496_v46, %v493_v48 }
 0x10f   : > { %v501_v54 = vadd.f32 %v499_v15, %v489_v49  ;;  %v502_v55 = vadd.f32 %v500_v51, %v490_v50 }
 0x111   : > { %v513_v56 = vadd.f32 %v511_v52, %v501_v54  ;;  %v514_v18 = vadd.f32 %v512_v53, %v502_v55 }
 0x113   : > { %v515_v57 = vsub.f32 0.0, %v513_v56  ;;  %v516_v58 = vsub.f32 0.0, %v514_v18 }
 0x115   : > { %v517_v59 = vmul.f32 1.442695, %v515_v57  ;;  %v519_v60 = vmul.f32 1.442695, %v516_v58 }
 0x117   : > { %741 = vpow2.f32 %v517_v59 }
 0x118   : > { %743 = vpow2.f32 %v519_v60 }
 0x121   : > { %v742_v61 = vpop.eup %741 }
 0x122   : > { %v744_v62 = vpop.eup %743  ;;  %v521_v23 = vadd.f32 1.0, %v742_v61 }
 0x123   : > { %v522_v63 = vadd.f32 1.0, %v744_v62 }
 0x124   : > { %745 = vrcp.f32 %v521_v23 }
 0x125   : > { %747 = vrcp.f32 %v522_v63 }
 0x12e   : > { %v746_v2 = vpop.eup %745 }
 0x12f   : > { %v748_v4 = vpop.eup %747 }
 0x130   : > { %v527_v5 = vcombine.low %v746_v2, %v748_v4  ;;  %555 = sbr.rel (!%p919_p9) target bundleno = 338 (0x152), region = 36 }
 0x132   : > { %v534_v6 = vrot.slane %v527_v5, %v533_v3 }
 0x134   : > { %v541_v7 = vrot.slane %v534_v6, %v533_v3 }
 0x136   : > { %547 = vst.msk [vmem:[%s168_s22] sm:$0x3] %vm545_vm0, %v541_v7 }
 0x137   : > { %s1126_s27 = smov (!%p558_p6, %s557_s27), 2 }
 0x138   : > { %s1058_s29 = sshll.u32 %s1126_s27, 4 }
 0x139   : > { %s562_s30 = ssub.s32 32, %s1058_s29 }
 0x13a   : > { %563 = vsyncadd %s549_s23, %s562_s30  ;;  %p657_p11 = scmp.ne.s32.totalorder %s1058_s29, 0  ;;  %s664_s3 = sshll.u32 %s896_s13, 5 }
 0x13b   : > { %s1068_s14 = scalar_lea.hbm %s1112_s2, %s664_s3  ;;  %s568_s16 = sshll.u32 %s168_s22, 4  ;;  %s569_s16 = int_to_ptr.vmem [resolvable:$true] %s568_s16 }
 0x13c   : > { %s777_s17 = scalar_lea.vmem %s569_s16, %s1058_s29  ;;  %s859_s25 = smov [#allocation5]  }
 0x13d   : > { %p778_p9 = scmp.ne.s32.totalorder %s569_s16, %s777_s17  ;;  %s781_s26 = sshll.u32 %s859_s25, 4  ;;  %s782_s26 = int_to_ptr.vmem [resolvable:$false] %s781_s26 }
 0x13e   : > { %s783_s19 = scalar_lea.vmem %s782_s26, 64  ;;  %p784_p12 = scmp.lt.s32.totalorder %s569_s16, %s782_s26 }
 0x13f   : > { %p779_p13 = pnand %p778_p9, %p657_p11  ;;  %p785_p0 = scmp.lt.s32.totalorder %s783_s19, %s777_s17 }
 0x141   : > { %p780_p8 = pneg %p779_p13  ;;  %p786_p1 = por %p785_p0, %p784_p12 }
 0x143   : > { %p787_p3 = pnand %p786_p1, %p780_p8 }
 0x145   : > { %790 = shalt.err (!%p787_p3)
}
 0x146   : > { %s791_s13 = scalar_lea.hbm %s1068_s14, %s1058_s29  ;;  %s795_s6 = scalar_lea.hbm %s1112_s2, 48 }
 0x147   : > { %p792_p4 = scmp.ne.s32.totalorder %s1068_s14, %s791_s13  ;;  %p796_p7 = scmp.lt.u32.totalorder %s1068_s14, %s1112_s2 }
 0x148   : > { %p797_p10 = scmp.lt.u32.totalorder %s795_s6, %s791_s13  ;;  %p799_p9 = scmp.lt.u32.totalorder %s791_s13, %s1068_s14 }
 0x149   : > { %p793_p5 = pnand %p792_p4, %p657_p11 }
 0x14a   : > { %p798_p6 = por %p797_p10, %p796_p7 }
 0x14b   : > { %p794_p2 = pneg %p793_p5 }
 0x14c   : > { %p800_p13 = por %p799_p9, %p798_p6 }
 0x14e   : > { %p801_p8 = pnand %p800_p13, %p794_p2 }
 0x150   : > { %804 = shalt.err (!%p801_p8)
}
 0x151   : > { %571 = dma.vmem_to_hbm [thread:$0]  (%p657_p11), %s569_s16, %s1058_s29, %s1068_s14, %s549_s23  }
 0x152 PF: > { %s580_s24 = sand.u32 1, %s831_s9   ;;  %p1117_p12 = scmp.ne.s32.totalorder %s1116_s21, 0 }
 0x153   : > { %p1118_p0 = scmp.ge.s32.totalorder %s843_s12, 2  ;;  %s581_s27 = scalar_lea.sflag [#allocation4], %s580_s24 }
 0x155   : > { %p668_p1 = pnand %p1118_p0, %p1117_p12 }
 0x157   : > { %826 = dma.done.wait (!%p668_p1), %s581_s27, 32  }
 0x158   : > { %828 = vsyncadd (!%p668_p1), %s581_s27, 4294967264  ;;  %p15_p3 = scmp.ge.s32.totalorder %s900_s15, 4   ;;  %s1119_s9 = smov %s835_s10 }
 0x159   : > { %s1120_s10 = smov %s839_s11  ;;  %s1121_s11 = smov %s912_s18 }
 0x15a   : > { %s1122_s12 = smov %s900_s15  ;;  %17 = sbr.rel (!%p15_p3) target bundleno = 5 (0x5), region = 73 }
 0x161   :  { %586 = vsyncpa [#allocation3], 1 }
 0x162   :  { %588 = vsyncpa [#allocation3 + $0x1], 1 }
 0x163   :  { %589 = vsyncpa [#allocation4], 1 }
 0x164   :  { %591 = vsyncpa [#allocation4 + $0x1], 1 }

</bundles_post_ra>
